<compile_context>
chip_gen: v5e
topology: v5e:2x2
jax: 0.10.0
libtpu: 0.0.40
codegen_flags: <defaults>
</compile_context>

<pallas_src>
import jax
import jax.numpy as jnp
from jax import lax
from jax.experimental import pallas as pl
from jax.experimental.pallas import tpu as pltpu


def _cdiv(a, b):
    return (a + b - 1) // b


def _round_up(n, m):
    return _cdiv(n, m) * m


_MIN_SCOPED_VMEM_DEFAULT = 16 << 20   # smallest per-gen default (v5e); v6e/v7x: 32 MiB
_ONEHOT_MAX_VOCAB = 2048              # beyond this the onehot VALU/MXU waste dominates
_XLA_FALLBACK_TOKENS = 1024           # tiny workloads: pallas_call overhead dominates


def _vmem_capacity_bytes():
    """Per-TensorCore VMEM capacity (generation aware); conservative fallback."""
    try:
        return int(pltpu.get_tpu_info().vmem_capacity_bytes)
    except Exception:
        return 64 << 20               # v7x per-TC capacity (smallest of all gens)


def _apply_max_norm(rows, max_norm, norm_type):
    """nn.Embedding(max_norm=...) forward semantics: rows whose p-norm exceeds
    max_norm are rescaled so their norm equals max_norm.
    (PyTorch also mutates the weight table in place; only the forward output
    is modeled here.)"""
    rows_f32 = rows.astype(jnp.float32)
    if norm_type == 2.0:
        # Sum-of-squares + rsqrt: single EUP op, exact (no approx reciprocal).
        sumsq = jnp.sum(rows_f32 * rows_f32, axis=-1, keepdims=True)
        scale = jnp.where(sumsq > max_norm * max_norm,
                          max_norm * lax.rsqrt(sumsq),
                          1.0)
    else:
        norm = jnp.sum(jnp.abs(rows_f32) ** norm_type, axis=-1,
                       keepdims=True) ** (1.0 / norm_type)
        scale = jnp.where(norm > max_norm, max_norm / norm, 1.0)
    return (rows_f32 * scale).astype(rows.dtype)


def _pick_block_tokens(n_tokens, block_tokens):
    # Multiple of 8 (f32 sublane tile) so the (T, D) output block is
    # sublane/lane dense.
    t = min(int(block_tokens), _round_up(n_tokens, 8))
    t = max(8, _round_up(t, 8))
    # Ensure >= 2 grid steps so v7x's second TensorCore gets work via the
    # "parallel" grid axis (no effect on single-TC v5e/v6e).
    if _cdiv(n_tokens, t) < 2 and n_tokens > 8:
        t = _round_up(_cdiv(n_tokens, 2), 8)
    return t


def _resident_table_spec(vp, d):
    index_map = lambda i: (0, 0)
    # Block index never changes -> DMA'd once; Buffered(1) drops the second,
    # never-used pipeline buffer and halves the table's VMEM footprint
    # (biggest impact on v7x's 64 MiB per-TC VMEM).
    try:
        return pl.BlockSpec((vp, d), index_map, pipeline_mode=pl.Buffered(1))
    except Exception:                       # older jax without pipeline_mode
        return pl.BlockSpec((vp, d), index_map)


# --------------------------------------------------------------------------
# Path 1: small vocab -> VMEM-resident table, one-hot gather on the MXU.
# --------------------------------------------------------------------------
def _make_onehot_kernel(max_norm, norm_type, precision):
    def kernel(ids_ref, table_ref, out_ref):
        ids = ids_ref[...]                               # (T, 1) int32
        t, vp = ids.shape[0], table_ref.shape[0]
        # One-hot gather on the MXU: onehot (T, Vp) @ table (Vp, D) -> (T, D).
        vocab_iota = lax.broadcasted_iota(jnp.int32, (t, vp), 1)
        onehot = (ids == vocab_iota).astype(table_ref.dtype)
        rows = jnp.dot(onehot, table_ref[...],
                       preferred_element_type=jnp.float32,
                       precision=precision)
        if max_norm is not None:
            rows = _apply_max_norm(rows, max_norm, norm_type)
        out_ref[...] = rows.astype(out_ref.dtype)
    return kernel


def _forward_onehot(flat_ids, table, max_norm, norm_type, block_tokens):
    v, d = table.shape
    dtype = table.dtype
    itemsize = jnp.dtype(dtype).itemsize
    n = flat_ids.shape[0]

    t = _pick_block_tokens(n, block_tokens)
    n_pad = _round_up(n, t)
    if n_pad != n:
        flat_ids = jnp.pad(flat_ids, (0, n_pad - n))     # pad with id 0 (valid row)
    ids_2d = flat_ids.reshape(n_pad, 1)

    # Pad V to the MXU contraction granularity (the onehot's lane dim).
    vp = _round_up(v, 128)
    if vp != v:
        table = jnp.pad(table, ((0, vp - v), (0, 0)))

    # f32 tables need HIGHEST precision so the one-hot matmul reproduces the
    # gathered rows exactly (default MXU path truncates operands to bf16).
    precision = lax.Precision.HIGHEST if dtype == jnp.float32 else None
    kernel = _make_onehot_kernel(max_norm, norm_type, precision)

    # Honest VMEM accounting: resident table (single buffer), double-buffered
    # ids/out blocks, the in-kernel (T, Vp) iota + onehot and (T, D) f32
    # intermediates, plus headroom. Never set the limit below the
    # per-generation default; cap at physical capacity minus headroom.
    vmem_need = (vp * d * itemsize                       # resident table (1 buffer)
                 + 2 * (t * d * itemsize + t * 4)        # dbl-buffered out / ids
                 + t * vp * (4 + itemsize)               # iota (i32) + onehot
                 + t * d * 4                             # f32 row block
                 + (2 << 20))                            # headroom
    cp = {"dimension_semantics": ("parallel",)}
    if vmem_need > _MIN_SCOPED_VMEM_DEFAULT:
        cap = _vmem_capacity_bytes() - (8 << 20)
        cp["vmem_limit_bytes"] = int(min(max(vmem_need, 32 << 20), cap))

    cost = pl.CostEstimate(
        flops=2 * n_pad * vp * d,
        transcendentals=0,
        bytes_accessed=vp * d * itemsize + n_pad * d * itemsize + n_pad * 4)

    out_flat = pl.pallas_call(
        kernel,
        out_shape=jax.ShapeDtypeStruct((n_pad, d), dtype),
        grid=(n_pad // t,),
        in_specs=[
            pl.BlockSpec((t, 1), lambda i: (i, 0)),      # token-id block
            _resident_table_spec(vp, d),                 # full table, resident
        ],
        out_specs=pl.BlockSpec((t, d), lambda i: (i, 0)),
        compiler_params=pltpu.CompilerParams(**cp),
        cost_estimate=cost,
    )(ids_2d, table)
    return out_flat[:n]


# --------------------------------------------------------------------------
# Path 2: large vocab -> table stays in HBM, per-row DMA gather.
# --------------------------------------------------------------------------
def _make_dma_gather_kernel(max_norm, norm_type, tokens_per_block):
    def kernel(ids_ref, table_hbm, out_ref, rows_vmem, sem):
        # ids_ref:   (N_pad,) int32 token ids, scalar-prefetched into SMEM.
        # table_hbm: (V, D) embedding table, left in HBM (memory_space=ANY).
        # out_ref:   (T, D) output block (VMEM).
        # rows_vmem: (T, D) VMEM gather buffer.  sem: shared DMA semaphore.
        base = pl.program_id(0) * tokens_per_block

        # Issue all T row copies up front: (1, D) row DMAs are latency-bound
        # (especially on v5e), so keep the whole block's copies in flight.
        @pl.loop(0, tokens_per_block)
        def _issue(i):
            tok = ids_ref[base + i]
            pltpu.make_async_copy(table_hbm.at[pl.ds(tok, 1), :],
                                  rows_vmem.at[pl.ds(i, 1), :],
                                  sem).start()

        # All copies share one DMA semaphore; one matching-size wait per copy.
        @pl.loop(0, tokens_per_block)
        def _drain(i):
            pltpu.make_async_copy(table_hbm.at[pl.ds(0, 1), :],
                                  rows_vmem.at[pl.ds(i, 1), :],
                                  sem).wait()

        rows = rows_vmem[...]
        if max_norm is not None:
            rows = _apply_max_norm(rows, max_norm, norm_type)
        out_ref[...] = rows.astype(out_ref.dtype)
    return kernel


def _forward_dma_gather(flat_ids, table, max_norm, norm_type, block_tokens):
    v, d = table.shape
    dtype = table.dtype
    itemsize = jnp.dtype(dtype).itemsize
    n = flat_ids.shape[0]

    t = _pick_block_tokens(n, block_tokens)
    n_pad = _round_up(n, t)
    if n_pad != n:
        flat_ids = jnp.pad(flat_ids, (0, n_pad - n))     # pad with id 0 (valid row)

    kernel = _make_dma_gather_kernel(max_norm, norm_type, t)

    cost = pl.CostEstimate(
        flops=0, transcendentals=0,
        bytes_accessed=2 * n_pad * d * itemsize + n_pad * 4)

    # TODO(synk): cross-block double-buffering of rows_vmem (prefetching block
    # i+1's rows while block i writes back) needs a carried scratch, which is
    # only safe on a non-"parallel" grid axis; left out so v7x can still split
    # the token-block axis across its two TensorCores.
    out_flat = pl.pallas_call(
        kernel,
        out_shape=jax.ShapeDtypeStruct((n_pad, d), dtype),
        grid_spec=pltpu.PrefetchScalarGridSpec(
            num_scalar_prefetch=1,
            grid=(n_pad // t,),
            in_specs=[pl.BlockSpec(memory_space=pl.ANY)],    # table stays in HBM
            out_specs=pl.BlockSpec((t, d), lambda i, ids: (i, 0)),
            scratch_shapes=[pltpu.VMEM((t, d), dtype),
                            pltpu.SemaphoreType.DMA],
        ),
        compiler_params=pltpu.CompilerParams(
            dimension_semantics=("parallel",)),
        cost_estimate=cost,
    )(flat_ids, table)
    return out_flat[:n]


# --------------------------------------------------------------------------
# Public wrapper (dispatcher).
# --------------------------------------------------------------------------
def input_embeddings_forward(x, table, *, max_norm=None, norm_type=2.0,
                             block_tokens=256, force_path=None):
    """x: (B, S) integer token ids; table: (V, D). Returns (B, S, D).

    force_path: None (auto), "xla", "onehot", or "dma".
    Token-id range validation is left to the caller (a device->host sync here
    would break under jax.jit); out-of-range ids give undefined rows.
    """
    b, s = x.shape
    v, d = table.shape
    n = b * s
    itemsize = jnp.dtype(table.dtype).itemsize
    flat_ids = x.reshape(n).astype(jnp.int32)

    path = force_path
    if path is None:
        table_bytes = v * d * itemsize
        if n <= _XLA_FALLBACK_TOKENS and table_bytes <= (1 << 20):
            path = "xla"          # ~1-step grid: pallas_call overhead dominates
        elif (_round_up(v, 128) <= _ONEHOT_MAX_VOCAB
              and table_bytes <= _vmem_capacity_bytes() // 4):
            path = "onehot"       # tiny vocab: VMEM-resident table, MXU onehot
        else:
            path = "dma"          # LLM-size vocab: HBM row gather via DMA

    if path == "xla":
        rows = table[flat_ids]
        if max_norm is not None:
            rows = _apply_max_norm(rows, max_norm, norm_type)
        return rows.reshape(b, s, d)
    if path == "onehot":
        out = _forward_onehot(flat_ids, table, max_norm, norm_type, block_tokens)
    elif path == "dma":
        out = _forward_dma_gather(flat_ids, table, max_norm, norm_type,
                                  block_tokens)
    else:
        raise ValueError(f"unknown path: {path!r}")
    return out.reshape(b, s, d)


def init_embedding_table(key, vocab_size, embedding_dim, padding_idx=None,
                         dtype=jnp.float32):
    """Matches torch.nn.Embedding init: N(0,1) rows, padding_idx row zeroed."""
    table = jax.random.normal(key, (vocab_size, embedding_dim), dtype=dtype)
    if padding_idx is not None:
        table = table.at[padding_idx].set(0.0)
    return table


if __name__ == "__main__":
    # Synthetic EmbeddConfig
    vocab_size = 64
    embedding_dim = 128       # lane-aligned embedding dim
    padding_idx = 0
    norm_type = 2.0
    # TODO(synk): scale_grad_by_freq only affects backward; no forward effect.

    batch, seq = 2, 8

    key = jax.random.PRNGKey(0)
    k_table, k_ids = jax.random.split(key)

    table = init_embedding_table(k_table, vocab_size, embedding_dim,
                                 padding_idx=padding_idx)
    x = jax.random.randint(k_ids, (batch, seq), 0, vocab_size, dtype=jnp.int32)

    # Mirror the PyTorch assert outside the (jit-able) kernel wrapper.
    assert int(jnp.max(x)) < vocab_size, (
        f"Token ID is greater than vocab_size: {int(jnp.max(x))} >= {vocab_size}"
    )

    ref = table[x.reshape(-1)].reshape(batch, seq, embedding_dim)

    # Exercise both Pallas paths explicitly, plus the auto dispatcher
    # (which picks the plain-XLA gather at this tiny shape).
    out_onehot = input_embeddings_forward(x, table, norm_type=norm_type,
                                          force_path="onehot")
    out_dma = input_embeddings_forward(x, table, norm_type=norm_type,
                                       force_path="dma")
    out_auto = input_embeddings_forward(x, table, norm_type=norm_type)
    jax.block_until_ready((out_onehot, out_dma, out_auto))

    for name, out in (("onehot", out_onehot), ("dma", out_dma),
                      ("auto", out_auto)):
        assert out.shape == (batch, seq, embedding_dim), name
        assert jnp.allclose(out, ref, atol=1e-6), f"{name}: mismatch vs gather"

    # max_norm path (exact rsqrt renorm, no approx reciprocal).
    mn = 1.0
    ref_mn = _apply_max_norm(ref.reshape(-1, embedding_dim), mn, norm_type)
    ref_mn = ref_mn.reshape(batch, seq, embedding_dim)
    out_mn_oh = input_embeddings_forward(x, table, max_norm=mn,
                                         norm_type=norm_type,
                                         force_path="onehot")
    out_mn_dma = input_embeddings_forward(x, table, max_norm=mn,
                                          norm_type=norm_type,
                                          force_path="dma")
    jax.block_until_ready((out_mn_oh, out_mn_dma))
    assert jnp.allclose(out_mn_oh, ref_mn, atol=1e-5), "onehot max_norm mismatch"
    assert jnp.allclose(out_mn_dma, ref_mn, atol=1e-5), "dma max_norm mismatch"

    print("KERNEL_OK")
</pallas_src>

<mosaic_0001>
module attributes {stable_mosaic.version = 11 : i64} {
  func.func @kernel(%arg0: i32, %arg1: memref<8x1xi32, #tpu.memory_space<vmem>>, %arg2: memref<128x128xf32, #tpu.memory_space<vmem>>, %arg3: memref<8x128xf32, #tpu.memory_space<vmem>>) attributes {dimension_semantics = [#tpu.dimension_semantics<parallel>], iteration_bounds = array<i64: 2>, scalar_prefetch = 0 : i64, scratch_operands = 0 : i64, tpu.core_type = #tpu.core_type<tc>, window_params = [{transform_indices = @transform_0, window_bounds = array<i64: 8, 1>}, {pipeline_mode = #tpu.pipeline_mode<synchronous>, transform_indices = @transform_1, window_bounds = array<i64: 128, 128>}, {transform_indices = @transform_2, window_bounds = array<i64: 8, 128>}]} {
    %c0 = arith.constant 0 : index
    %c0_0 = arith.constant 0 : index
    %0 = vector.load %arg1[%c0, %c0_0] : memref<8x1xi32, #tpu.memory_space<vmem>>, vector<8x1xi32>
    %1 = tpu.iota {dimensions = array<i32: 1>} : vector<8x128xi32>
    %2 = vector.broadcast %0 : vector<8x1xi32> to vector<8x128xi32>
    %3 = arith.cmpi eq, %2, %1 : vector<8x128xi32>
    %4 = arith.extui %3 : vector<8x128xi1> to vector<8x128xi32>
    %5 = arith.sitofp %4 : vector<8x128xi32> to vector<8x128xf32>
    %c0_1 = arith.constant 0 : index
    %c0_2 = arith.constant 0 : index
    %6 = vector.load %arg2[%c0_1, %c0_2] : memref<128x128xf32, #tpu.memory_space<vmem>>, vector<128x128xf32>
    %cst = arith.constant dense<0.000000e+00> : vector<8x128xf32>
    %7 = tpu.matmul %5, %6, %cst {dimension_numbers = #tpu.dot_dimension_numbers<[1], [0], [0], [1], [0, 0, 1, 1], [], []>, precision = #tpu.contract_precision<fp32>} : vector<8x128xf32>, vector<128x128xf32>, vector<8x128xf32> -> vector<8x128xf32>
    %c0_3 = arith.constant 0 : index
    %c0_4 = arith.constant 0 : index
    %8 = vector.load %arg3[%c0_3, %c0_4] : memref<8x128xf32, #tpu.memory_space<vmem>>, vector<8x128xf32>
    tpu.vector_store %arg3[%c0_3, %c0_4], %7 {strides = array<i32>} : memref<8x128xf32, #tpu.memory_space<vmem>>, vector<8x128xf32>,
    return
  }
  func.func @transform_0(%arg0: i32) -> (i32, i32) {
    %c0_i32 = arith.constant 0 : i32
    %c0_i32_0 = arith.constant 0 : i32
    return %arg0, %c0_i32 : i32, i32
  }
  func.func @transform_1(%arg0: i32) -> (i32, i32) {
    %c0_i32 = arith.constant 0 : i32
    %c0_i32_0 = arith.constant 0 : i32
    %c0_i32_1 = arith.constant 0 : i32
    return %c0_i32, %c0_i32_0 : i32, i32
  }
  func.func @transform_2(%arg0: i32) -> (i32, i32) {
    %c0_i32 = arith.constant 0 : i32
    %c0_i32_0 = arith.constant 0 : i32
    return %arg0, %c0_i32 : i32, i32
  }
}

</mosaic_0001>

<bundles_post_ra>
// kernel: tpu_custom_call.1
= control target key start
LH: loop header
LB: loop body
LE: loop exit
PB: predicated region body
PF: predicated region fallthrough
CT: control target
= control target key end

     0   :  { %7 = vsyncpa [#allocation3], 0  ;;  %s1124_s0 = inlined_call_operand.vmem [shape: s32[16,1], index: 0, kind: input, shape index: {}]   ;;  %s1125_s1 = inlined_call_operand.hbm [shape: f32[128,128], index: 1, kind: input, shape index: {}]   ;;  %s1126_s2 = inlined_call_operand.hbm [shape: f32[16,128], index: 2, kind: output, shape index: {}]  }
   0x1   :  { %8 = vsyncpa [#allocation4], 0 }
   0x2   :  { %10 = vsyncpa [#allocation4 + $0x1], 0  ;;  %s801_s9 = smov 0   ;;  %s803_s10 = smov 0  }
   0x3   :  { %s805_s11 = smov 0   ;;  %s807_s12 = smov 0  }
   0x4 LB: > { %s822_s13 = sadd.s32 4294967295, %s778_s12   ;;  %s610_s14 = sadd.s32 4294967294, %s778_s12   ;;  %s778_s12 = sphi %s807_s12, %s1132_s12   ;;  %s774_s11 = sphi %s805_s11, %s1131_s11   ;;  %s770_s10 = sphi %s803_s10, %s1130_s10   ;;  %s766_s9 = sphi %s801_s9, %s1129_s9  }
   0x5   : > { %s826_s15 = sadd.s32 1, %s778_s12   ;;  %s70_s16 = sadd.s32 1, %s774_s11 }
   0x6   : > { %s67_s17 = ssub.s32 %s778_s12, %s826_s15  ;;  %p80_p0 = scmp.ne.s32.totalorder %s774_s11, %s770_s10 }
   0x7   : > { %p68_p1 = scmp.eq.s32.totalorder %s67_s17, 0  ;;  %p81_p2 = scmp.eq.s32.totalorder %s822_s13, 1 }
   0x8   : > { %p86_p3 = scmp.ne.s32.totalorder %s770_s10, %s766_s9  ;;  %p87_p4 = scmp.eq.s32.totalorder %s610_s14, 1 }
   0x9   : > { %s837_s18 = scalar_select %p68_p1, %s774_s11, %s70_s16  }
   0xa   : > { %p839_p5 = por %p81_p2, %p80_p0  ;;  %p843_p6 = por %p87_p4, %p86_p3 }
   0xb   : > { %p611_p7 = scmp.ge.s32.totalorder %s778_s12, 1  ;;  %p94_p8 = scmp.lt.s32.totalorder %s778_s12, 3 }
   0xc   : > { %p640_p9 = scmp.eq.s32.totalorder %s822_s13, 0  ;;  %s105_s23 = sshll.u32 %s1125_s1, 4  ;;  %s106_s23 = int_to_ptr.hbm [resolvable:$true] %s105_s23 }
   0xd   : > { %p95_p10 = pnand %p611_p7, %p94_p8  ;;  %s780_s24 = smov [#allocation2]  }
   0xe   : > { %s107_s25 = sshll.u32 %s780_s24, 4  ;;  %s781_s26 = smov 128   ;;  %s108_s25 = int_to_ptr.vmem [resolvable:$true] %s107_s25 }
   0xf   : > { %p632_p11 = pneg %p95_p10  ;;  %s782_s27 = smov 8  }
  0x10   : > { %130 = sbr.rel (%p95_p10) target bundleno = 295 (0x127), region = 28 }
  0x11   : > { %p633_p12 = pnand %p640_p9, %p632_p11 }
  0x13   : > { %635 = dma.hbm_to_vmem [thread:$0]  (!%p633_p12), %s106_s23, 2048, %s108_s25, [#allocation3], %s781_s26, %s781_s26, %s782_s27  }
  0x15   : > { %757 = dma.done.wait (%p640_p9), [#allocation3], 2048  }
  0x16   : > { %759 = vsyncadd (%p640_p9), [#allocation3], 4294965248  ;;  %p152_p13 = scmp.lt.s32.totalorder %s822_s13, 1  ;;  %v783_v0 = vmov 0   ;;  %v180_v2 = vld [vmem:[#allocation2 + $0x78] sm:$0xff]  ;;  %v179_v3 = vld [vmem:[#allocation2 + $0x70] sm:$0xff] }
  0x17   : > { %681 = vset.pattern.permute.xlu0 %v783_v0  ;;  %v864_v4 = vand.u32 4294901760, %v180_v2  ;;  %v866_v5 = vand.u32 4294901760, %v179_v3  ;;  %v178_v6 = vld [vmem:[#allocation2 + $0x68] sm:$0xff]  ;;  %v177_v7 = vld [vmem:[#allocation2 + $0x60] sm:$0xff]  ;;  %v176_v8 = vld [vmem:[#allocation2 + $0x58] sm:$0xff]  ;;  %s149_s5 = sand.u32 1, %s770_s10  }
  0x18   : > { %s153_s28 = scalar_select %p152_p13, %s822_s13, 1  ;;  %v868_v9 = vand.u32 4294901760, %v178_v6  ;;  %v870_v10 = vand.u32 4294901760, %v177_v7  ;;  %v872_v11 = vand.u32 4294901760, %v176_v8  ;;  %v175_v12 = vld [vmem:[#allocation2 + $0x50] sm:$0xff]  ;;  %v174_v13 = vld [vmem:[#allocation2 + $0x48] sm:$0xff] }
  0x19   : > { %v173_v14 = vld [vmem:[#allocation2 + $0x40] sm:$0xff]  ;;  %v875_v15 = vsub.f32 %v180_v2, %v864_v4  ;;  %v878_v16 = vsub.f32 %v179_v3, %v866_v5  ;;  %182 = vmatpush.msra.mxu0 %v864_v4  ;;  %v881_v17 = vand.u32 4294901760, %v175_v12  ;;  %v883_v18 = vand.u32 4294901760, %v174_v13  ;;  %378 = vmatpush.msra.mxu3 %v864_v4  ;;  %v172_v35 = vld [vmem:[#allocation2 + $0x38] sm:$0xff]  ;;  %v171_v36 = vld [vmem:[#allocation2 + $0x30] sm:$0xff]  ;;  %s616_s6 = sshll.u32 %s149_s5, 3 }
  0x1a   : > { %s617_s29 = sshll.u32 %s153_s28, 3  ;;  %v887_v19 = vsub.f32 %v178_v6, %v868_v9  ;;  %v890_v20 = vsub.f32 %v177_v7, %v870_v10  ;;  %v893_v21 = vsub.f32 %v176_v8, %v872_v11  ;;  %v895_v22 = vand.u32 4294901760, %v173_v14  ;;  %v170_v40 = vld [vmem:[#allocation2 + $0x28] sm:$0xff]  ;;  %v169_v42 = vld [vmem:[#allocation2 + $0x20] sm:$0xff]  ;;  %v168_v50 = vld [vmem:[#allocation2 + $0x18] sm:$0xff]  ;;  %s623_s7 = sshll.u32 %s822_s13, 3 }
  0x1b   : > { %s155_s4 = scalar_lea.vmem %s1124_s0, %s617_s29  ;;  %v224_v23 = vand.u32 4294901760, %v875_v15  ;;  %v230_v24 = vand.u32 4294901760, %v878_v16  ;;  %v900_v25 = vsub.f32 %v175_v12, %v881_v17  ;;  %184 = vmatpush.msra.mxu0 %v866_v5  ;;  %325 = vmatpush.msra.mxu2 %v875_v15  ;;  %v907_v28 = vsub.f32 %v174_v13, %v883_v18  ;;  %v167_v56 = vld [vmem:[#allocation2 + $0x10] sm:$0xff]  ;;  %v166_v62 = vld [vmem:[#allocation2 + $0x8] sm:$0xff]  ;;  %v165_v6 = vld [vmem:[#allocation2] sm:$0xff]  ;;  %s534_s16 = scalar_lea.hbm %s1126_s2, %s623_s7 }
  0x1c   : > { %v156_v1 = vld [vmem:[%s155_s4] sm:$0xff]  ;;  %v236_v26 = vand.u32 4294901760, %v887_v19  ;;  %v242_v27 = vand.u32 4294901760, %v890_v20  ;;  %380 = vmatpush.msra.mxu3 %v866_v5  ;;  %v248_v31 = vand.u32 4294901760, %v893_v21  ;;  %v924_v34 = vsub.f32 %v173_v14, %v895_v22  ;;  %s151_s17 = scalar_lea.vmem [#allocation5], %s616_s6  ;;  %s538_s22 = sshll.u32 %s534_s16, 4  ;;  %s539_s22 = int_to_ptr.hbm [resolvable:$true] %s538_s22 }
  0x1d   : > { %160 = vperm.xlu0 %681, %v156_v1   ;;  %v225_v29 = vsub.f32 %v875_v15, %v224_v23  ;;  %v231_v30 = vsub.f32 %v878_v16, %v230_v24  ;;  %186 = vmatpush.msra.mxu0 %v868_v9  ;;  %v254_v33 = vand.u32 4294901760, %v900_v25  ;;  %v260_v41 = vand.u32 4294901760, %v907_v28  ;;  %s536_s21 = sshll.u32 %s151_s17, 4  ;;  %s524_s23 = scalar_lea.sflag [#allocation4], %s149_s5  ;;  %s537_s21 = int_to_ptr.vmem [resolvable:$true] %s536_s21 }
  0x1e   : > { %328 = vmatpush.msra.mxu2 %v878_v16  ;;  %v237_v32 = vsub.f32 %v887_v19, %v236_v26  ;;  %382 = vmatpush.msra.mxu3 %v868_v9  ;;  %v243_v39 = vsub.f32 %v890_v20, %v242_v27  ;;  %v249_v44 = vsub.f32 %v893_v21, %v248_v31  ;;  %v937_v45 = vand.u32 4294901760, %v172_v35  ;;  %s726_s13 = sshra.s32 %s539_s22, 4  ;;  %s732_s27 = scalar_lea.hbm %s1126_s2, 16  ;;  %s727_s13 = int_to_ptr.hbm [resolvable:$true] %s726_s13 }
  0x1f   : > { %v226_v37 = vand.u32 4294901760, %v225_v29  ;;  %v232_v38 = vand.u32 4294901760, %v231_v30  ;;  %188 = vmatpush.msra.mxu0 %v870_v10  ;;  %v940_v46 = vand.u32 4294901760, %v171_v36  ;;  %v255_v47 = vsub.f32 %v900_v25, %v254_v33  ;;  %s728_s24 = scalar_lea.hbm %s727_s13, 8  ;;  %p733_p3 = scmp.lt.s32.totalorder %s727_s13, %s1126_s2 }
  0x20   : > { %331 = vmatpush.msra.mxu2 %v887_v19  ;;  %384 = vmatpush.msra.mxu3 %v870_v10  ;;  %v238_v43 = vand.u32 4294901760, %v237_v32  ;;  %v266_v48 = vand.u32 4294901760, %v924_v34  ;;  %v946_v49 = vand.u32 4294901760, %v170_v40  ;;  %v244_v51 = vand.u32 4294901760, %v243_v39  ;;  %p729_p0 = scmp.ne.s32.totalorder %s727_s13, %s728_s24  ;;  %p734_p4 = scmp.lt.s32.totalorder %s732_s27, %s728_s24 }
  0x21   : > { %227 = vmatpush.msra.mxu1 %v226_v37  ;;  %190 = vmatpush.msra.mxu0 %v872_v11  ;;  %v951_v52 = vsub.f32 %v172_v35, %v937_v45  ;;  %v954_v53 = vsub.f32 %v171_v36, %v940_v46  ;;  %v957_v54 = vand.u32 4294901760, %v169_v42  ;;  %v261_v55 = vsub.f32 %v907_v28, %v260_v41 }
  0x22   : > { %334 = vmatpush.msra.mxu2 %v890_v20  ;;  %386 = vmatpush.msra.mxu3 %v872_v11  ;;  %v250_v57 = vand.u32 4294901760, %v249_v44  ;;  %v966_v59 = vsub.f32 %v170_v40, %v946_v49  ;;  %v969_v60 = vand.u32 4294901760, %v168_v50  ;;  %v267_v61 = vsub.f32 %v924_v34, %v266_v48  ;;  %p730_p1 = pnand %p729_p0, %p839_p5  ;;  %p735_p7 = por %p734_p4, %p733_p3 }
  0x23   : > { %233 = vmatpush.msra.mxu1 %v232_v38  ;;  %192 = vmatpush.msra.mxu0 %v881_v17  ;;  %v272_v58 = vand.u32 4294901760, %v951_v52  ;;  %v256_v63 = vand.u32 4294901760, %v255_v47  ;;  %v278_v0 = vand.u32 4294901760, %v954_v53  ;;  %v978_v1 = vsub.f32 %v169_v42, %v957_v54 }
  0x24   : > { %337 = vmatpush.msra.mxu2 %v893_v21  ;;  %388 = vmatpush.msra.mxu3 %v881_v17  ;;  %v981_v2 = vand.u32 4294901760, %v167_v56  ;;  %v262_v3 = vand.u32 4294901760, %v261_v55  ;;  %v284_v8 = vand.u32 4294901760, %v966_v59  ;;  %v990_v12 = vsub.f32 %v168_v50, %v969_v60  ;;  %p731_p2 = pneg %p730_p1 }
  0x25   : > { %239 = vmatpush.msra.mxu1 %v238_v43  ;;  %194 = vmatpush.msra.mxu0 %v883_v18  ;;  %v273_v7 = vsub.f32 %v951_v52, %v272_v58  ;;  %v993_v13 = vand.u32 4294901760, %v166_v62  ;;  %v268_v14 = vand.u32 4294901760, %v267_v61  ;;  %v279_v29 = vsub.f32 %v954_v53, %v278_v0 }
  0x26   : > { %340 = vmatpush.msra.mxu2 %v900_v25  ;;  %390 = vmatpush.msra.mxu3 %v883_v18  ;;  %v290_v30 = vand.u32 4294901760, %v978_v1  ;;  %v1002_v32 = vsub.f32 %v167_v56, %v981_v2  ;;  %v1005_v35 = vand.u32 4294901760, %v165_v6  ;;  %v285_v37 = vsub.f32 %v966_v59, %v284_v8  ;;  %p736_p8 = pnand %p735_p7, %p731_p2 }
  0x27   : > { %245 = vmatpush.msra.mxu1 %v244_v51  ;;  %196 = vmatpush.msra.mxu0 %v895_v22  ;;  %v274_v36 = vand.u32 4294901760, %v273_v7  ;;  %v296_v38 = vand.u32 4294901760, %v990_v12  ;;  %v1014_v39 = vsub.f32 %v166_v62, %v993_v13  ;;  %v280_v40 = vand.u32 4294901760, %v279_v29 }
  0x28   : > { %343 = vmatpush.msra.mxu2 %v907_v28  ;;  %392 = vmatpush.msra.mxu3 %v895_v22  ;;  %v291_v42 = vsub.f32 %v978_v1, %v290_v30  ;;  %v302_v43 = vand.u32 4294901760, %v1002_v32  ;;  %v1024_v44 = vsub.f32 %v165_v6, %v1005_v35  ;;  %v286_v47 = vand.u32 4294901760, %v285_v37 }
  0x29   : > { %251 = vmatpush.msra.mxu1 %v250_v57  ;;  %198 = vmatpush.msra.mxu0 %v937_v45  ;;  %v297_v50 = vsub.f32 %v990_v12, %v296_v38  ;;  %v308_v51 = vand.u32 4294901760, %v1014_v39 }
  0x2a   : > { %346 = vmatpush.msra.mxu2 %v924_v34  ;;  %394 = vmatpush.msra.mxu3 %v937_v45  ;;  %v292_v55 = vand.u32 4294901760, %v291_v42  ;;  %v303_v56 = vsub.f32 %v1002_v32, %v302_v43  ;;  %v314_v57 = vand.u32 4294901760, %v1024_v44 }
  0x2b   : > { %257 = vmatpush.msra.mxu1 %v256_v63  ;;  %200 = vmatpush.msra.mxu0 %v940_v46  ;;  %v298_v61 = vand.u32 4294901760, %v297_v50  ;;  %v309_v62 = vsub.f32 %v1014_v39, %v308_v51 }
  0x2c   : > { %349 = vmatpush.msra.mxu2 %v951_v52  ;;  %396 = vmatpush.msra.mxu3 %v940_v46  ;;  %v304_v63 = vand.u32 4294901760, %v303_v56 }
  0x2d   : > { %263 = vmatpush.msra.mxu1 %v262_v3  ;;  %202 = vmatpush.msra.mxu0 %v946_v49  ;;  %v315_v3 = vsub.f32 %v1024_v44, %v314_v57  ;;  %v310_v6 = vand.u32 4294901760, %v309_v62 }
  0x2e   : > { %352 = vmatpush.msra.mxu2 %v954_v53  ;;  %398 = vmatpush.msra.mxu3 %v946_v49 }
  0x2f   : > { %269 = vmatpush.msra.mxu1 %v268_v14  ;;  %204 = vmatpush.msra.mxu0 %v957_v54  ;;  %v316_v7 = vand.u32 4294901760, %v315_v3 }
  0x30   : > { %355 = vmatpush.msra.mxu2 %v966_v59  ;;  %400 = vmatpush.msra.mxu3 %v957_v54 }
  0x31   : > { %275 = vmatpush.msra.mxu1 %v274_v36  ;;  %206 = vmatpush.msra.mxu0 %v969_v60 }
  0x32   : > { %358 = vmatpush.msra.mxu2 %v978_v1  ;;  %402 = vmatpush.msra.mxu3 %v969_v60 }
  0x33   : > { %281 = vmatpush.msra.mxu1 %v280_v40  ;;  %208 = vmatpush.msra.mxu0 %v981_v2 }
  0x34   : > { %361 = vmatpush.msra.mxu2 %v990_v12  ;;  %404 = vmatpush.msra.mxu3 %v981_v2 }
  0x35   : > { %287 = vmatpush.msra.mxu1 %v286_v47  ;;  %210 = vmatpush.msra.mxu0 %v993_v13 }
  0x36   : > { %364 = vmatpush.msra.mxu2 %v1002_v32  ;;  %406 = vmatpush.msra.mxu3 %v993_v13 }
  0x37   : > { %293 = vmatpush.msra.mxu1 %v292_v55  ;;  %212 = vmatpush.msra.mxu0 %v1005_v35 }
  0x38   : > { %367 = vmatpush.msra.mxu2 %v1014_v39  ;;  %408 = vmatpush.msra.mxu3 %v1005_v35 }
  0x39   : > { %419 = vmatpush.msrb.mxu0 %v224_v23  ;;  %299 = vmatpush.msra.mxu1 %v298_v61 }
  0x3a   : > { %370 = vmatpush.msra.mxu2 %v1024_v44 }
  0x3b   : > { %423 = vmatpush.msrb.mxu0 %v230_v24  ;;  %305 = vmatpush.msra.mxu1 %v304_v63 }
  0x3d   : > { %427 = vmatpush.msrb.mxu0 %v236_v26  ;;  %311 = vmatpush.msra.mxu1 %v310_v6 }
  0x3f   : > { %431 = vmatpush.msrb.mxu0 %v242_v27  ;;  %317 = vmatpush.msra.mxu1 %v316_v7 }
  0x41   : > { %486 = vmatpush.msrb.mxu1 %v864_v4  ;;  %435 = vmatpush.msrb.mxu0 %v248_v31  ;;  %v157_v4 = vlaneseq }
  0x43   : > { %488 = vmatpush.msrb.mxu1 %v866_v5  ;;  %439 = vmatpush.msrb.mxu0 %v254_v33  ;;  %v158_v5 = vand.u32 127, %v157_v4 }
  0x45   : > { %490 = vmatpush.msrb.mxu1 %v868_v9  ;;  %443 = vmatpush.msrb.mxu0 %v260_v41 }
  0x47   : > { %492 = vmatpush.msrb.mxu1 %v870_v10  ;;  %447 = vmatpush.msrb.mxu0 %v266_v48  ;;  %v784_v10 = vmov 1.0  }
  0x49   : > { %494 = vmatpush.msrb.mxu1 %v872_v11  ;;  %451 = vmatpush.msrb.mxu0 %v272_v58  ;;  %v785_v11 = vmov 0.0  }
  0x4b   : > { %496 = vmatpush.msrb.mxu1 %v881_v17  ;;  %455 = vmatpush.msrb.mxu0 %v278_v0 }
  0x4d   : > { %498 = vmatpush.msrb.mxu1 %v883_v18  ;;  %459 = vmatpush.msrb.mxu0 %v284_v8 }
  0x4f   : > { %500 = vmatpush.msrb.mxu1 %v895_v22  ;;  %463 = vmatpush.msrb.mxu0 %v290_v30 }
  0x51   : > { %502 = vmatpush.msrb.mxu1 %v937_v45  ;;  %467 = vmatpush.msrb.mxu0 %v296_v38 }
  0x53   : > { %504 = vmatpush.msrb.mxu1 %v940_v46  ;;  %471 = vmatpush.msrb.mxu0 %v302_v43 }
  0x55   : > { %506 = vmatpush.msrb.mxu1 %v946_v49  ;;  %475 = vmatpush.msrb.mxu0 %v308_v51 }
  0x57   : > { %508 = vmatpush.msrb.mxu1 %v957_v54  ;;  %479 = vmatpush.msrb.mxu0 %v314_v57 }
  0x59   : > { %510 = vmatpush.msrb.mxu1 %v969_v60 }
  0x5b   : > { %512 = vmatpush.msrb.mxu1 %v981_v2 }
  0x5d   : > { %514 = vmatpush.msrb.mxu1 %v993_v13 }
  0x5f   : > { %516 = vmatpush.msrb.mxu1 %v1005_v35 }
  0x8f   : > { %v161_v9 = vpop.permute.xlu0 %160 }
  0x90   : > { %vm162_vm0 = vcmp.eq.s32.totalorder %v161_v9, %v158_v5 }
  0x91   : > { %619 = vmatmul.msk.f32.vlgmr.msra.gmra.mxu1 %vm162_vm0, %v784_v10  ;;  %v618_v15 = vsel %vm162_vm0, 1.0, %v785_v11 }
  0x92   : > { %v214_v16 = vsub.f32 %v618_v15, %v618_v15 }
  0x94   : > { %373 = vmatmul.f32.vlgmr.msra.gmra.mxu2 %v214_v16  ;;  %v215_v17 = vand.u32 4294901760, %v214_v16 }
  0x96   : > { %412 = vmatmul.f32.vlgmr.msra.gmra.mxu3 %v215_v17  ;;  %v216_v18 = vsub.f32 %v214_v16, %v215_v17 }
  0x98   : > { %v217_v19 = vand.u32 4294901760, %v216_v18 }
  0x99   : > { %621 = vmatmul.msk.f32.vlgmr.msrb.gmra.mxu1 %vm162_vm0, %v784_v10 }
  0x9a   : > { %218 = vmatmul.f32.vlgmr.msra.gmra.mxu0 %v217_v19 }
  0xa2   : > { %620 = vmatmul.msk.f32.vlgmr.msrb.gmra.mxu0 %vm162_vm0, %v784_v10 }
 0x10e   : > { %v320_v20 = vpop.f32.mrf.mxu1 }
 0x116   : > { %v519_v31 = vpop.f32.mrf.mxu1 }
 0x117   : > { %v219_v21 = vpop.f32.mrf.mxu0  ;;  %v374_v23 = vpop.f32.mrf.mxu2 }
 0x118   : > { %v321_v22 = vadd.f32 %v320_v20, %v219_v21 }
 0x119   : > { %v413_v25 = vpop.f32.mrf.mxu3 }
 0x11a   : > { %v375_v24 = vadd.f32 %v374_v23, %v321_v22 }
 0x11c   : > { %v414_v26 = vadd.f32 %v413_v25, %v375_v24 }
 0x11f   : > { %v482_v27 = vpop.f32.mrf.mxu0 }
 0x120   : > { %v483_v28 = vadd.f32 %v482_v27, %v414_v26 }
 0x122   : > { %v520_v33 = vadd.f32 %v519_v31, %v483_v28 }
 0x124   : > { %522 = vst [vmem:[%s151_s17] sm:$0xff] %v520_v33 }
 0x125   : > { %739 = shalt.err (!%p736_p8)
}
 0x126   : > { %630 = dma.vmem_to_hbm [thread:$0]  (%p839_p5), %s537_s21, 128, %s539_s22, %s524_s23  }
 0x127 PF: > { %p642_p9 = scmp.ge.s32.totalorder %s778_s12, 2  ;;  %s550_s30 = sand.u32 1, %s766_s9  }
 0x128   : > { %s551_s3 = scalar_lea.sflag [#allocation4], %s550_s30 }
 0x129   : > { %p637_p10 = pnand %p642_p9, %p843_p6 }
 0x12b   : > { %p638_p11 = pneg %p637_p10 }
 0x12d   : > { %761 = dma.done.wait (%p638_p11), %s551_s3, 128  }
 0x12e   : > { %763 = vsyncadd (%p638_p11), %s551_s3, 4294967168  ;;  %p13_p12 = scmp.ge.s32.totalorder %s826_s15, 4   ;;  %s1129_s9 = smov %s770_s10 }
 0x12f   : > { %s1130_s10 = smov %s774_s11  ;;  %s1131_s11 = smov %s837_s18 }
 0x130   : > { %s1132_s12 = smov %s826_s15  ;;  %15 = sbr.rel (!%p13_p12) target bundleno = 4 (0x4), region = 68 }
 0x135   :  { %557 = vsyncpa [#allocation3], 1 }
 0x136   :  { %559 = vsyncpa [#allocation3 + $0x1], 1 }
 0x137   :  { %560 = vsyncpa [#allocation4], 1 }
 0x138   :  { %562 = vsyncpa [#allocation4 + $0x1], 1 }

</bundles_post_ra>
